<compile_context>
chip_gen: v6e
topology: v6e:2x2x1
jax: 0.10.0
libtpu: 0.0.40
codegen_flags: <defaults>
</compile_context>

<pallas_src>
import functools

import jax
import jax.numpy as jnp
from jax.experimental import pallas as pl
from jax.experimental.pallas import tpu as pltpu

BN_EPS = 1e-5
HIDDEN = 32


def _round_up(a, m):
    return ((a + m - 1) // m) * m


def _mlp_kernel(x_ref, w1_ref, w2_ref, small_ref, o_ref):
    # small_ref rows: 0 -> b1, 1 -> b2 (BN1-folded), 2 -> w3^T (BN2-folded),
    #                 3 -> b3 (column 0).  All f32.
    x = x_ref[...]                                   # (TB, F)
    b1 = small_ref[0:1, :]                           # (1, H)
    b2 = small_ref[1:2, :]                           # (1, H)
    w3t = small_ref[2:3, :]                          # (1, H)
    b3 = small_ref[3:4, 0:1]                         # (1, 1)

    # layer_1 + ReLU   (BN1 is folded into layer_2's weights/bias)
    h = jnp.dot(x, w1_ref[...], preferred_element_type=jnp.float32) + b1
    h = jnp.maximum(h, 0.0)

    # layer_2 (+ folded BN1) + ReLU   (BN2 is folded into layer_out)
    h = jnp.dot(h.astype(w2_ref.dtype), w2_ref[...],
                preferred_element_type=jnp.float32) + b2
    h = jnp.maximum(h, 0.0)

    # dropout: identity in eval mode

    # layer_out (+ folded BN2) + sigmoid, produced lane-dense as (1, TB):
    #   logits[0, b] = sum_k w3t[0, k] * h[b, k]
    # Contraction ((1,),(1,)) is the q@k^T / transpose_rhs MXU pattern — no
    # explicit XLU transpose of h is materialized.
    logits = jax.lax.dot_general(
        w3t, h,
        dimension_numbers=(((1,), (1,)), ((), ())),
        preferred_element_type=jnp.float32) + b3
    o_ref[...] = jax.nn.sigmoid(logits).astype(o_ref.dtype)


def fold_params(params, compute_dtype=jnp.float32):
    """Fold eval-mode BatchNorms into the following Linear layers and pack the
    small per-feature vectors into a single (4, H) f32 array."""
    w1, b1 = params["w1"], params["b1"]
    w2, b2 = params["w2"], params["b2"]
    w3, b3 = params["w3"], params["b3"]

    s1 = params["g1"] * jax.lax.rsqrt(params["v1"] + BN_EPS)   # (1, H)
    t1 = params["beta1"] - params["m1"] * s1
    s2 = params["g2"] * jax.lax.rsqrt(params["v2"] + BN_EPS)
    t2 = params["beta2"] - params["m2"] * s2

    # BN1(h) @ W2 + b2 == h @ (s1^T * W2) + (t1 @ W2 + b2)
    w2f = w2 * s1.reshape(-1, 1)
    b2f = t1 @ w2 + b2
    # BN2(h) @ W3 + b3 == h @ (s2^T * W3) + (t2 @ W3 + b3)
    w3f = w3 * s2.reshape(-1, 1)                                # (H, 1)
    b3f = t2 @ w3 + b3                                          # (1, 1)

    H = w1.shape[1]
    small = jnp.concatenate(
        [b1, b2f, w3f.reshape(1, H), jnp.broadcast_to(b3f, (1, H))],
        axis=0).astype(jnp.float32)                             # (4, H)

    return w1.astype(compute_dtype), w2f.astype(compute_dtype), small


def _tpu_topology():
    """Best-effort (VMEM bytes, TensorCores per chip); conservative fallbacks."""
    vmem = None
    cores = None
    try:
        info = pltpu.get_tpu_info()
        for a in ("vmem_capacity_bytes", "vmem_size_bytes", "vmem_bytes"):
            v = getattr(info, a, None)
            if v:
                vmem = int(v)
                break
        for a in ("num_cores", "num_tensorcores", "tensor_cores_per_chip",
                  "cores_per_chip"):
            v = getattr(info, a, None)
            if v:
                cores = int(v)
                break
    except Exception:
        pass
    if vmem is None:
        try:
            kind = jax.devices()[0].device_kind.lower()
        except Exception:
            kind = ""
        if ("v5 lite" in kind or "v5e" in kind or "v6" in kind):
            vmem = 128 << 20            # v5e / v6e
        else:
            vmem = 64 << 20             # v7x / unknown: be conservative
    if cores is None:
        cores = 2                       # conservative: assume 2 TCs (v7x)
    return vmem, cores


def torch_mlp_forward(x, params, *, tile_b=8192, compute_dtype=jnp.float32):
    """Eval-mode forward of TorchNeuralNetwork.  x: (B, F) float32 -> (B, 1)."""
    B, F = x.shape
    H = params["w1"].shape[1]

    w1c, w2c, small = fold_params(params, compute_dtype)
    x_isz = jnp.dtype(compute_dtype).itemsize

    vmem_phys, n_cores = _tpu_topology()

    # ---- tile selection: as few grid steps as the VMEM budget allows --------
    # per-row bytes: double-buffered x tile + double-buffered (1,tb) output
    # + f32 activations/temporaries (h1, h2, matmul accumulators ~ 4*H f32).
    per_row = 2 * F * x_isz + 2 * 4 + 4 * H * 4
    tb_vmem = max(128, ((vmem_phys // 3) // per_row) // 128 * 128)
    tb = min(max(128, _round_up(tile_b, 128)), tb_vmem)
    if n_cores >= 2:
        # keep >= n_cores grid steps so every TensorCore gets work (v7x);
        # single-TC chips (v5e/v6e) skip this and use the biggest tile.
        tb = min(tb, max(128, _round_up(-(-B // n_cores), 128)))
    if B <= tb:
        tb = _round_up(B, 8)            # single grid step covers whole batch
    Bp = _round_up(B, tb)
    grid = (Bp // tb,)

    # ---- avoid wrapper-side copies: cast/pad only when strictly needed ------
    xp = x if x.dtype == compute_dtype else x.astype(compute_dtype)
    if Bp != B:
        xp = jnp.pad(xp, ((0, Bp - B), (0, 0)))   # padded rows are sliced off

    # ---- explicit scoped-VMEM request (v5e default is only 16 MiB) ----------
    vmem_needed = (2 * tb * F * x_isz                       # x double buffer
                   + 2 * _round_up(tb, 128) * 4             # out double buffer
                   + 2 * (F * H + H * H + 4 * H) * 4        # resident weights
                   + 4 * tb * H * 4)                        # f32 activations
    vmem_limit = int(min(max(vmem_needed + (8 << 20), 32 << 20),
                         vmem_phys * 3 // 4))
    vmem_limit = max(vmem_limit, vmem_needed + (2 << 20))

    in_specs = [
        pl.BlockSpec((tb, F), lambda i: (i, 0)),     # x tile (double-buffered)
        pl.BlockSpec((F, H), lambda i: (0, 0)),      # w1: constant index -> no re-DMA
        pl.BlockSpec((H, H), lambda i: (0, 0)),      # folded w2 (resident)
        pl.BlockSpec((4, H), lambda i: (0, 0)),      # packed small params (resident)
    ]
    out_spec = pl.BlockSpec((1, tb), lambda i: (0, i))   # lane-dense output

    out = pl.pallas_call(
        _mlp_kernel,
        out_shape=jax.ShapeDtypeStruct((1, Bp), jnp.float32),
        grid_spec=pltpu.PrefetchScalarGridSpec(
            num_scalar_prefetch=0,
            grid=grid,
            in_specs=in_specs,
            out_specs=out_spec,
        ),
        compiler_params=pltpu.CompilerParams(
            dimension_semantics=("parallel",),
            vmem_limit_bytes=vmem_limit),
    )(xp, w1c, w2c, small)

    return out[0, :B].reshape(B, 1)


def init_params(key, n_features, hidden=HIDDEN):
    """Deterministic synthetic parameters (PyTorch shapes, pre-transposed)."""
    ks = jax.random.split(key, 12)

    def lin(kw, kb, fan_in, fan_out):
        bound = 1.0 / jnp.sqrt(fan_in)
        w = jax.random.uniform(kw, (fan_in, fan_out), jnp.float32, -bound, bound)
        b = jax.random.uniform(kb, (1, fan_out), jnp.float32, -bound, bound)
        return w, b

    w1, b1 = lin(ks[0], ks[1], n_features, hidden)
    w2, b2 = lin(ks[2], ks[3], hidden, hidden)
    w3, b3 = lin(ks[4], ks[5], hidden, 1)

    def bn(kg, kb, km, kv, dim):
        g = 1.0 + 0.1 * jax.random.normal(kg, (1, dim), jnp.float32)
        beta = 0.1 * jax.random.normal(kb, (1, dim), jnp.float32)
        m = 0.1 * jax.random.normal(km, (1, dim), jnp.float32)
        v = jnp.abs(jax.random.normal(kv, (1, dim), jnp.float32)) + 0.5
        return g, beta, m, v

    g1, beta1, m1, v1 = bn(ks[6], ks[7], ks[8], ks[9], hidden)
    g2, beta2, m2, v2 = bn(ks[10], ks[11], ks[6], ks[7], hidden)

    return dict(w1=w1, b1=b1, g1=g1, beta1=beta1, m1=m1, v1=v1,
                w2=w2, b2=b2, g2=g2, beta2=beta2, m2=m2, v2=v2,
                w3=w3, b3=b3)


def reference_forward(x, p):
    """Unfolded eval-mode reference (matches the PyTorch module)."""
    h = jnp.maximum(x @ p["w1"] + p["b1"], 0.0)
    h = (h - p["m1"]) * jax.lax.rsqrt(p["v1"] + BN_EPS) * p["g1"] + p["beta1"]
    h = jnp.maximum(h @ p["w2"] + p["b2"], 0.0)
    h = (h - p["m2"]) * jax.lax.rsqrt(p["v2"] + BN_EPS) * p["g2"] + p["beta2"]
    return jax.nn.sigmoid(h @ p["w3"] + p["b3"])


if __name__ == "__main__":
    key = jax.random.PRNGKey(0)
    k_x, k_p = jax.random.split(key)

    F = 16                                        # n_features
    params = init_params(k_p, F)

    # jit so any residual cast/pad fuses with the pallas_call's surrounding graph.
    fwd = jax.jit(torch_mlp_forward)
    fwd_small_tiles = jax.jit(functools.partial(torch_mlp_forward, tile_b=128))

    # Case 1: tiny batch -> single grid step, no host pad / no cast.
    x1 = jax.random.normal(k_x, (16, F), jnp.float32)
    o1 = jax.block_until_ready(fwd(x1, params))
    assert o1.shape == (16, 1)
    assert jnp.allclose(o1, reference_forward(x1, params), atol=1e-4, rtol=1e-4), \
        "mismatch vs reference (case 1)"

    # Case 2: multi-step lane-dense output path, tile divides B -> no padding.
    x2 = jax.random.normal(k_x, (384, F), jnp.float32)
    o2 = jax.block_until_ready(fwd_small_tiles(x2, params))
    assert jnp.allclose(o2, reference_forward(x2, params), atol=1e-4, rtol=1e-4), \
        "mismatch vs reference (case 2)"

    # Case 3: multi-step with a ragged last tile (padding path).
    x3 = jax.random.normal(k_x, (300, F), jnp.float32)
    o3 = jax.block_until_ready(fwd_small_tiles(x3, params))
    assert jnp.allclose(o3, reference_forward(x3, params), atol=1e-4, rtol=1e-4), \
        "mismatch vs reference (case 3)"

    print("KERNEL_OK")
</pallas_src>

<mosaic_0001>
module attributes {stable_mosaic.version = 11 : i64} {
  func.func @_mlp_kernel(%arg0: i32, %arg1: memref<16x16xf32, #tpu.memory_space<vmem>>, %arg2: memref<16x32xf32, #tpu.memory_space<vmem>>, %arg3: memref<32x32xf32, #tpu.memory_space<vmem>>, %arg4: memref<4x32xf32, #tpu.memory_space<vmem>>, %arg5: memref<1x16xf32, #tpu.memory_space<vmem>>) attributes {dimension_semantics = [#tpu.dimension_semantics<parallel>], iteration_bounds = array<i64: 1>, scalar_prefetch = 0 : i64, scratch_operands = 0 : i64, tpu.core_type = #tpu.core_type<tc>, window_params = [{transform_indices = @transform_0, window_bounds = array<i64: 16, 16>}, {pipeline_mode = #tpu.pipeline_mode<synchronous>, transform_indices = @transform_1, window_bounds = array<i64: 16, 32>}, {pipeline_mode = #tpu.pipeline_mode<synchronous>, transform_indices = @transform_2, window_bounds = array<i64: 32, 32>}, {pipeline_mode = #tpu.pipeline_mode<synchronous>, transform_indices = @transform_3, window_bounds = array<i64: 4, 32>}, {transform_indices = @transform_4, window_bounds = array<i64: 1, 16>}]} {
    %c0 = arith.constant 0 : index
    %c0_0 = arith.constant 0 : index
    %0 = vector.load %arg1[%c0, %c0_0] : memref<16x16xf32, #tpu.memory_space<vmem>>, vector<16x16xf32>
    %c0_1 = arith.constant 0 : index
    %c0_2 = arith.constant 0 : index
    %1 = vector.load %arg4[%c0_1, %c0_2] : memref<4x32xf32, #tpu.memory_space<vmem>>, vector<1x32xf32>
    %c1 = arith.constant 1 : index
    %c0_3 = arith.constant 0 : index
    %2 = vector.load %arg4[%c1, %c0_3] : memref<4x32xf32, #tpu.memory_space<vmem>>, vector<1x32xf32>
    %c2 = arith.constant 2 : index
    %c0_4 = arith.constant 0 : index
    %3 = vector.load %arg4[%c2, %c0_4] : memref<4x32xf32, #tpu.memory_space<vmem>>, vector<1x32xf32>
    %c3 = arith.constant 3 : index
    %c0_5 = arith.constant 0 : index
    %4 = vector.load %arg4[%c3, %c0_5] : memref<4x32xf32, #tpu.memory_space<vmem>>, vector<1x1xf32>
    %c0_6 = arith.constant 0 : index
    %c0_7 = arith.constant 0 : index
    %5 = vector.load %arg2[%c0_6, %c0_7] : memref<16x32xf32, #tpu.memory_space<vmem>>, vector<16x32xf32>
    %cst = arith.constant dense<0.000000e+00> : vector<16x32xf32>
    %6 = tpu.matmul %0, %5, %cst {dimension_numbers = #tpu.dot_dimension_numbers<[1], [0], [0], [1], [0, 0, 1, 1], [], []>} : vector<16x16xf32>, vector<16x32xf32>, vector<16x32xf32> -> vector<16x32xf32>
    %7 = vector.broadcast %1 : vector<1x32xf32> to vector<16x32xf32>
    %8 = arith.addf %6, %7 : vector<16x32xf32>
    %cst_8 = arith.constant 0.000000e+00 : f32
    %9 = vector.broadcast %cst_8 : f32 to vector<16x32xf32>
    %10 = arith.maximumf %8, %9 : vector<16x32xf32>
    %c0_9 = arith.constant 0 : index
    %c0_10 = arith.constant 0 : index
    %11 = vector.load %arg3[%c0_9, %c0_10] : memref<32x32xf32, #tpu.memory_space<vmem>>, vector<32x32xf32>
    %cst_11 = arith.constant dense<0.000000e+00> : vector<16x32xf32>
    %12 = tpu.matmul %10, %11, %cst_11 {dimension_numbers = #tpu.dot_dimension_numbers<[1], [0], [0], [1], [0, 0, 1, 1], [], []>} : vector<16x32xf32>, vector<32x32xf32>, vector<16x32xf32> -> vector<16x32xf32>
    %13 = vector.broadcast %2 : vector<1x32xf32> to vector<16x32xf32>
    %14 = arith.addf %12, %13 : vector<16x32xf32>
    %cst_12 = arith.constant 0.000000e+00 : f32
    %15 = vector.broadcast %cst_12 : f32 to vector<16x32xf32>
    %16 = arith.maximumf %14, %15 : vector<16x32xf32>
    %cst_13 = arith.constant dense<0.000000e+00> : vector<1x16xf32>
    %17 = tpu.matmul %3, %16, %cst_13 {dimension_numbers = #tpu.dot_dimension_numbers<[1], [1], [0], [0], [0, 0, 1, 0], [], []>} : vector<1x32xf32>, vector<16x32xf32>, vector<1x16xf32> -> vector<1x16xf32>
    %18 = vector.broadcast %4 : vector<1x1xf32> to vector<1x16xf32>
    %19 = arith.addf %17, %18 : vector<1x16xf32>
    %20 = arith.negf %19 : vector<1x16xf32>
    %21 = math.exp %20 : vector<1x16xf32>
    %cst_14 = arith.constant 1.000000e+00 : f32
    %22 = vector.broadcast %cst_14 : f32 to vector<1x16xf32>
    %23 = arith.addf %22, %21 : vector<1x16xf32>
    %24 = arith.divf %22, %23 : vector<1x16xf32>
    %c0_15 = arith.constant 0 : index
    %c0_16 = arith.constant 0 : index
    %25 = vector.load %arg5[%c0_15, %c0_16] : memref<1x16xf32, #tpu.memory_space<vmem>>, vector<1x16xf32>
    tpu.vector_store %arg5[%c0_15, %c0_16], %24 {strides = array<i32>} : memref<1x16xf32, #tpu.memory_space<vmem>>, vector<1x16xf32>,
    return
  }
  func.func @transform_0(%arg0: i32) -> (i32, i32) {
    %c0_i32 = arith.constant 0 : i32
    %c0_i32_0 = arith.constant 0 : i32
    return %arg0, %c0_i32 : i32, i32
  }
  func.func @transform_1(%arg0: i32) -> (i32, i32) {
    %c0_i32 = arith.constant 0 : i32
    %c0_i32_0 = arith.constant 0 : i32
    %c0_i32_1 = arith.constant 0 : i32
    return %c0_i32, %c0_i32_0 : i32, i32
  }
  func.func @transform_2(%arg0: i32) -> (i32, i32) {
    %c0_i32 = arith.constant 0 : i32
    %c0_i32_0 = arith.constant 0 : i32
    %c0_i32_1 = arith.constant 0 : i32
    return %c0_i32, %c0_i32_0 : i32, i32
  }
  func.func @transform_3(%arg0: i32) -> (i32, i32) {
    %c0_i32 = arith.constant 0 : i32
    %c0_i32_0 = arith.constant 0 : i32
    %c0_i32_1 = arith.constant 0 : i32
    return %c0_i32, %c0_i32_0 : i32, i32
  }
  func.func @transform_4(%arg0: i32) -> (i32, i32) {
    %c0_i32 = arith.constant 0 : i32
    %c0_i32_0 = arith.constant 0 : i32
    return %c0_i32, %arg0 : i32, i32
  }
}

</mosaic_0001>

<bundles_post_ra>
// kernel: torch_mlp_forward.1
= control target key start
LH: loop header
LB: loop body
LE: loop exit
PB: predicated region body
PF: predicated region fallthrough
CT: control target
= control target key end

     0   :  { %vm30_vm0 = vcmask 130048   ;;  %s464_s0 = inlined_call_operand.vmem [shape: f32[16,16], index: 0, kind: input, shape index: {}]   ;;  %s465_s1 = inlined_call_operand.vmem [shape: f32[16,32], index: 1, kind: input, shape index: {}]   ;;  %s466_s2 = inlined_call_operand.vmem [shape: f32[32,32], index: 2, kind: input, shape index: {}]   ;;  %s467_s3 = inlined_call_operand.vmem [shape: f32[4,32], index: 3, kind: input, shape index: {}]   ;;  %s468_s4 = inlined_call_operand.hbm [shape: f32[1,16], index: 4, kind: output, shape index: {}]  }
   0x1   :  { %v25_v0 = vld [vmem:[%s465_s1 + $0x8] sm:$0xff]  ;;  %v24_v1 = vld [vmem:[%s465_s1] sm:$0xff] }
   0x2   :  { %v18_v2 = vld [vmem:[%s464_s0] sm:$0xff]  ;;  %335 = vmatprep.subr.mxu0 %v25_v0 }
   0x3   :  { %339 = vmatprep.mubr.msk.f32.mxu0 %vm30_vm0, %v18_v2 }
   0x4   :  { %9 = vsyncpa [#allocation3], 0  ;;  %336 = vmatpush3.msra.mxu0 %v25_v0  ;;  %v19_v3 = vld [vmem:[%s464_s0 + $0x8] sm:$0xff]  ;;  %v117_v4 = vld [vmem:[%s466_s2 + $0x18] sm:$0xff]  ;;  %vm122_vm1 = vcmask 261120   ;;  %v391_v15 = vmov 0.0  }
   0x5   :  { %337 = vmatprep.subr.mxu0 %v24_v1  ;;  %342 = vmatprep.subr.mxu1 %v117_v4  ;;  %v116_v5 = vld [vmem:[%s466_s2 + $0x10] sm:$0xff]  ;;  %v115_v6 = vld [vmem:[%s466_s2 + $0x8] sm:$0xff]  ;;  %v114_v7 = vld [vmem:[%s466_s2] sm:$0xff]  ;;  %vm392_vm2 = vmmov 0   ;;  %v393_v17 = vmov 0   ;;  %s394_s10 = smov [#allocation2]  }
   0x6   :  { %338 = vmatpush3.msra.mxu0 %v24_v1  ;;  %343 = vmatpush3.msra.mxu1 %v117_v4  ;;  %v312_v8 = vld [vmem:[%s467_s3] ss:$0 sm:$0xff]  ;;  %v23_v16 = vld [vmem:[%s467_s3 + $0x3] sm:$0x1]  ;;  %v315_v18 = vld [vmem:[%s467_s3 + $0x1] ss:$0 sm:$0xff] }
   0x7   :  { %340 = vmatmul.mubr.msk.f32.vlgmr.msra.gmra.mxu0 %vm30_vm0, %v19_v3  ;;  %344 = vmatprep.subr.mxu1 %v116_v5  ;;  %v22_v25 = vld [vmem:[%s467_s3 + $0x2] sm:$0x1]  ;;  %s304_s11 = sshll.u32 %s394_s10, 4  ;;  %vm296_vm3 = vcmask 122880   ;;  %s305_s11 = int_to_ptr.vmem [resolvable:$true] %s304_s11 }
   0x8   :  { %345 = vmatpush3.msra.mxu1 %v116_v5  ;;  %353 = vmatprep.subr.mxu0 %v391_v15  ;;  %s369_s12 = scalar_lea.vmem %s305_s11, 16  ;;  %s373_s3 = scalar_lea.vmem %s305_s11, 32 }
   0x9   :  { %346 = vmatprep.subr.mxu1 %v115_v6  ;;  %357 = vmatprep.mubr.msk.f32.mxu0 %vm392_vm2, %v391_v15  ;;  %p370_p0 = scmp.ne.s32.totalorder %s305_s11, %s369_s12  ;;  %p374_p1 = scmp.lt.s32.totalorder %s305_s11, %s305_s11 }
   0xa   :  { %347 = vmatpush3.msra.mxu1 %v115_v6  ;;  %364 = vset.pattern.permute.xlu0 %v393_v17  ;;  %p375_p2 = scmp.lt.s32.totalorder %s373_s3, %s369_s12 }
   0xb   :  { %348 = vmatprep.subr.mxu1 %v114_v7  ;;  %208 = vperm.xlu0 %364, %v23_v16  }
   0xc   :  { %349 = vmatpush3.msra.mxu1 %v114_v7  ;;  %p376_p3 = por %p375_p2, %p374_p1 }
   0xe   :  { %p377_p4 = pnand %p376_p3, %p370_p0 }
  0x86   :  { %v209_v26 = vpop.permute.xlu0 %208 }
  0xc7   :  { %v341_v9 = vpop.f32.mrf.mxu0 }
  0xc8   :  { %v109_v10 = vadd.f32 %v341_v9, %v312_v8 }
  0xc9   :  { %v103_v11 = vpop.f32.mrf.mxu0 }
  0xca   :  { %v104_v12 = vadd.f32 %v312_v8, %v103_v11  ;;  %v113_v14 = vmax.f32 %v109_v10, 0.0 }
  0xcc   :  { %v112_v13 = vmax.f32 %v104_v12, 0.0 }
  0xce   :  { %350 = vmatprep.mubr.msk.f32.mxu1 %vm122_vm1, %v112_v13 }
  0xcf   :  { %351 = vmatmul.mubr.msk.f32.vlgmr.msra.gmra.mxu1 %vm122_vm1, %v113_v14 }
 0x18f   :  { %v352_v19 = vpop.f32.mrf.mxu1 }
 0x190   :  { %v201_v20 = vadd.f32 %v352_v19, %v315_v18 }
 0x191   :  { %v195_v21 = vpop.f32.mrf.mxu1 }
 0x192   :  { %v205_v22 = vmax.f32 %v201_v20, 0.0  ;;  %v196_v23 = vadd.f32 %v315_v18, %v195_v21 }
 0x194   :  { %354 = vmatpush3.xpose.msk.msra.mxu0 %vm122_vm1, %v205_v22  ;;  %v204_v24 = vmax.f32 %v196_v23, 0.0 }
 0x195   :  { %355 = vmatprep.subr.mxu0 %v391_v15 }
 0x198   :  { %356 = vmatpush3.xpose.msk.msra.mxu0 %vm122_vm1, %v204_v24 }
 0x19b   :  { %358 = vmatmul.mubr.msk.f32.vlgmr.msra.gmra.mxu0 %vm122_vm1, %v22_v25 }
 0x25b   :  { %v286_v27 = vpop.f32.mrf.mxu0 }
 0x25c   :  { %v287_v28 = vadd.f32 %v286_v27, %v209_v26 }
 0x25d   :  { %v359_v29 = vpop.f32.mrf.mxu0 }
 0x25e   :  { %v321_v30 = vmul.f32 -1.442695, %v287_v28 }
 0x260   :  { %365 = vpow2.f32 %v321_v30 }
 0x26d   :  { %v366_v31 = vpop.eup %365 }
 0x26e   :  { %v293_v32 = vadd.f32 1.0, %v366_v31 }
 0x270   :  { %367 = vrcp.f32 %v293_v32 }
 0x27d   :  { %v368_v33 = vpop.eup %367 }
 0x27e   :  { %297 = vst.msk [vmem:[#allocation2] sm:$0x1] %vm296_vm3, %v368_v33 }
 0x27f   :  { %380 = shalt.err (!%p377_p4)
}
 0x280   :  { %307 = dma.vmem_to_hbm [thread:$0]  %s305_s11, 16, %s468_s4, [#allocation3]  }
 0x281   :  { %389 = dma.done.wait [#allocation3], 16  }
 0x282   :  { %390 = vsyncadd [#allocation3], 4294967280 }
 0x283   :  { %311 = vsyncpa [#allocation3], 1 }

</bundles_post_ra>
